<compile_context>
chip_gen: v5e
topology: v5e:2x2
jax: 0.10.0
libtpu: 0.0.40
codegen_flags: <defaults>
</compile_context>

<pallas_src>
import math

import jax
import jax.numpy as jnp
from jax.experimental import pallas as pl
from jax.experimental.pallas import tpu as pltpu


_LANE = 128
_GRAIN = 256   # MXU-friendly grain for N/K tiles (v6e/v7x MXU is 2x256x256)


# ---------------------------------------------------------------------------
# Kernels
# ---------------------------------------------------------------------------
def _linear_kernel_kred(a_ref, w_ref, o_ref, acc_ref):
    """One (tm, tn) output tile, reduced over the K grid axis (axis 2).

    a_ref: (tm, tk) activation tile;  w_ref: (tk, tn) prepacked [K, N] weight tile.
    """
    k = pl.program_id(2)

    @pl.when(k == 0)
    def _():
        acc_ref[...] = jnp.zeros_like(acc_ref)

    acc_ref[...] += jnp.dot(a_ref[...], w_ref[...],
                            preferred_element_type=jnp.float32)

    @pl.when(k == pl.num_programs(2) - 1)
    def _():
        o_ref[...] = acc_ref[...].astype(o_ref.dtype)


def _linear_kernel_single_k(a_ref, w_ref, o_ref):
    """K fits in one tile: no scratch accumulator, fully parallel 2-D grid."""
    o_ref[...] = jnp.dot(a_ref[...], w_ref[...],
                         preferred_element_type=jnp.float32).astype(o_ref.dtype)


# ---------------------------------------------------------------------------
# Sizing helpers
# ---------------------------------------------------------------------------
def _round_up(x, m):
    return ((x + m - 1) // m) * m


def _device_vmem_params():
    """(tile budget bytes, scoped vmem limit bytes), generation aware."""
    try:
        phys = int(pltpu.get_tpu_info().vmem_capacity_bytes)
    except Exception:
        phys = 64 << 20
    if phys >= (96 << 20):            # v5e / v6e: 128 MiB physical VMEM
        return 80 << 20, 100 << 20
    return 20 << 20, 48 << 20         # v7x: 64 MiB per TensorCore


def _pick_tile(dim, cap, grain=_GRAIN):
    """Pad-to-tile selection (never divisor collapse).

    If the 128-rounded dim fits under `cap`, use it whole (no over-padding).
    Otherwise split into ceil(dim/cap) roughly equal, grain-aligned blocks.
    """
    t = _round_up(dim, _LANE)
    if t <= cap:
        return t
    nb = pl.cdiv(dim, cap)
    return min(cap, _round_up(pl.cdiv(dim, nb), grain))


def _working_set_bytes(tm, tn, tk, in_bytes=2, out_bytes=2):
    # double-buffered A + W tiles + f32 accumulator + double-buffered out tile
    return 2 * (tm * tk + tk * tn) * in_bytes + tm * tn * 4 + 2 * tm * tn * out_bytes


# ---------------------------------------------------------------------------
# Linear module (prepacks the weight once, like BitBLAS transform_weight)
# ---------------------------------------------------------------------------
class BitblasLinearTPU:
    """TPU Pallas equivalent of bitblas.module.Linear forward (consistent path)."""

    COMPUTE_DTYPE = jnp.bfloat16   # float16 is mapped to TPU-native bfloat16

    def __init__(self, in_features, out_features, bias=False,
                 tn_cap=1024, tk_cap=2048):
        if in_features % 16 != 0 or out_features % 16 != 0:
            raise ValueError("`in_features` and `out_features` must be divisible by 16.")
        if bias:
            # TODO(synk): bias add not implemented (module default is bias=False).
            raise NotImplementedError("bias=True not supported")
        self.in_features = in_features
        self.out_features = out_features

        budget, limit = _device_vmem_params()
        self.vmem_limit = int(limit)

        # Pick (tn, tk) once; budget assumes the largest tm (512) we ever use,
        # so any forward-time tm also fits.
        tn = _pick_tile(out_features, tn_cap)
        tk = _pick_tile(in_features, tk_cap)
        tm_max = 512
        while _working_set_bytes(tm_max, tn, tk) > budget:
            if tk >= tn and tk > _LANE:
                tk = max(_LANE, tk // 2)
            elif tn > _LANE:
                tn = max(_LANE, tn // 2)
            elif tm_max > 16:
                tm_max //= 2
            else:
                break
        self.tn, self.tk, self.tm_max = tn, tk, tm_max
        self.n_pad = _round_up(out_features, tn)
        self.k_pad = _round_up(in_features, tk)
        self.weight_packed = None

    def load_and_transform_weight(self, weight):
        """weight: [out_features, in_features] (PyTorch layout).  One-time prepack to
        padded bf16 [K_pad, N_pad]; amortized over every forward."""
        N, K = weight.shape
        assert (N, K) == (self.out_features, self.in_features)
        w = jnp.asarray(weight).astype(self.COMPUTE_DTYPE).T                 # [K, N]
        if (self.k_pad, self.n_pad) != (K, N):
            w = jnp.pad(w, ((0, self.k_pad - K), (0, self.n_pad - N)))
        self.weight_packed = w

    def __call__(self, A):
        assert self.weight_packed is not None, "call load_and_transform_weight() first"
        *lead, K = A.shape
        assert K == self.in_features, "in_features mismatch"
        M = math.prod(lead) if lead else 1

        a2d = jnp.asarray(A).reshape(M, K).astype(self.COMPUTE_DTYPE)

        # Small-M (decode/GEMV): tm = m_pad -> single M block, weight streamed once.
        tm = min(self.tm_max, _round_up(max(M, 1), 16))
        m_pad = _round_up(M, tm)
        tn, tk = self.tn, self.tk
        n_pad, k_pad = self.n_pad, self.k_pad

        # Keep >= 2 parallel blocks (256-aligned halves along N) for megacore.
        if (m_pad // tm) * (n_pad // tn) == 1 and tn >= 512 and tn % 512 == 0:
            tn //= 2

        # Pad only the (small) activation per call.
        if (m_pad, k_pad) != (M, K):
            a2d = jnp.pad(a2d, ((0, m_pad - M), (0, k_pad - K)))

        nbm, nbn, nbk = m_pad // tm, n_pad // tn, k_pad // tk
        in_b = jnp.dtype(self.COMPUTE_DTYPE).itemsize
        cost = pl.CostEstimate(
            flops=2 * m_pad * n_pad * k_pad,
            transcendentals=0,
            bytes_accessed=(m_pad * k_pad * in_b) * nbn       # A re-read per N block
            + (k_pad * n_pad * in_b) * nbm                    # W re-read per M block
            + m_pad * n_pad * in_b,
        )
        out_shape = jax.ShapeDtypeStruct((m_pad, n_pad), self.COMPUTE_DTYPE)

        if nbk == 1:
            out2d = pl.pallas_call(
                _linear_kernel_single_k,
                out_shape=out_shape,
                grid_spec=pltpu.PrefetchScalarGridSpec(
                    num_scalar_prefetch=0,
                    grid=(nbm, nbn),
                    in_specs=[
                        pl.BlockSpec((tm, k_pad), lambda i, j: (i, 0)),
                        pl.BlockSpec((k_pad, tn), lambda i, j: (0, j)),
                    ],
                    out_specs=pl.BlockSpec((tm, tn), lambda i, j: (i, j)),
                ),
                compiler_params=pltpu.CompilerParams(
                    dimension_semantics=("parallel", "parallel"),
                    vmem_limit_bytes=self.vmem_limit,
                ),
                cost_estimate=cost,
            )(a2d, self.weight_packed)
        else:
            out2d = pl.pallas_call(
                _linear_kernel_kred,
                out_shape=out_shape,
                grid_spec=pltpu.PrefetchScalarGridSpec(
                    num_scalar_prefetch=0,
                    grid=(nbm, nbn, nbk),
                    in_specs=[
                        pl.BlockSpec((tm, tk), lambda i, j, k: (i, k)),
                        pl.BlockSpec((tk, tn), lambda i, j, k: (k, j)),
                    ],
                    out_specs=pl.BlockSpec((tm, tn), lambda i, j, k: (i, j)),
                    scratch_shapes=[pltpu.VMEM((tm, tn), jnp.float32)],
                ),
                compiler_params=pltpu.CompilerParams(
                    dimension_semantics=("parallel", "parallel", "arbitrary"),
                    vmem_limit_bytes=self.vmem_limit,
                ),
                cost_estimate=cost,
            )(a2d, self.weight_packed)

        out2d = out2d[:M, : self.out_features]
        return out2d.reshape(*lead, self.out_features)


# ---------------------------------------------------------------------------
# Self-test
# ---------------------------------------------------------------------------
if __name__ == "__main__":
    in_features = 256
    out_features = 128
    batch, seq = 2, 8   # leading dims of A -> M = 16

    key = jax.random.PRNGKey(0)
    k_a, k_w = jax.random.split(key)
    A = jax.random.normal(k_a, (batch, seq, in_features), dtype=jnp.float32).astype(
        jnp.bfloat16
    )
    weight = (
        jax.random.normal(k_w, (out_features, in_features), dtype=jnp.float32) * 0.05
    ).astype(jnp.bfloat16)

    ref = jnp.dot(A.astype(jnp.float32), weight.astype(jnp.float32).T).astype(
        jnp.bfloat16
    )

    # Path 1: K fits a single tile (2-D fully parallel grid).
    layer = BitblasLinearTPU(in_features, out_features, bias=False)
    layer.load_and_transform_weight(weight)       # one-time [K, N] prepack
    out = jax.block_until_ready(layer(A))
    assert out.shape == (batch, seq, out_features)
    assert out.dtype == jnp.bfloat16
    err = jnp.max(jnp.abs(out.astype(jnp.float32) - ref.astype(jnp.float32)))
    assert float(err) < 1e-1, f"max abs error {err}"

    # Path 2: force the K-reduction (3-D grid + f32 accumulator) path.
    layer_kred = BitblasLinearTPU(in_features, out_features, bias=False, tk_cap=128)
    layer_kred.load_and_transform_weight(weight)
    out2 = jax.block_until_ready(layer_kred(A))
    err2 = jnp.max(jnp.abs(out2.astype(jnp.float32) - ref.astype(jnp.float32)))
    assert float(err2) < 1e-1, f"max abs error (k-red) {err2}"

    print("KERNEL_OK")
</pallas_src>

<mosaic_0001>
module attributes {stable_mosaic.version = 11 : i64} {
  func.func @_linear_kernel_single_k(%arg0: i32, %arg1: i32, %arg2: memref<16x256xbf16, #tpu.memory_space<vmem>>, %arg3: memref<256x128xbf16, #tpu.memory_space<vmem>>, %arg4: memref<16x128xbf16, #tpu.memory_space<vmem>>) attributes {dimension_semantics = [#tpu.dimension_semantics<parallel>, #tpu.dimension_semantics<parallel>], iteration_bounds = array<i64: 1, 1>, scalar_prefetch = 0 : i64, scratch_operands = 0 : i64, tpu.core_type = #tpu.core_type<tc>, window_params = [{transform_indices = @transform_0, window_bounds = array<i64: 16, 256>}, {transform_indices = @transform_1, window_bounds = array<i64: 256, 128>}, {transform_indices = @transform_2, window_bounds = array<i64: 16, 128>}]} {
    %c0 = arith.constant 0 : index
    %c0_0 = arith.constant 0 : index
    %0 = vector.load %arg2[%c0, %c0_0] : memref<16x256xbf16, #tpu.memory_space<vmem>>, vector<16x256xbf16>
    %c0_1 = arith.constant 0 : index
    %c0_2 = arith.constant 0 : index
    %1 = vector.load %arg3[%c0_1, %c0_2] : memref<256x128xbf16, #tpu.memory_space<vmem>>, vector<256x128xbf16>
    %cst = arith.constant dense<0.000000e+00> : vector<16x128xf32>
    %2 = tpu.matmul %0, %1, %cst {dimension_numbers = #tpu.dot_dimension_numbers<[1], [0], [0], [1], [0, 0, 1, 1], [], []>} : vector<16x256xbf16>, vector<256x128xbf16>, vector<16x128xf32> -> vector<16x128xf32>
    %3 = arith.truncf %2 : vector<16x128xf32> to vector<16x128xbf16>
    %c0_3 = arith.constant 0 : index
    %c0_4 = arith.constant 0 : index
    %4 = vector.load %arg4[%c0_3, %c0_4] : memref<16x128xbf16, #tpu.memory_space<vmem>>, vector<16x128xbf16>
    tpu.vector_store %arg4[%c0_3, %c0_4], %3 {strides = array<i32>} : memref<16x128xbf16, #tpu.memory_space<vmem>>, vector<16x128xbf16>,
    return
  }
  func.func @transform_0(%arg0: i32, %arg1: i32) -> (i32, i32) {
    %c0_i32 = arith.constant 0 : i32
    %c0_i32_0 = arith.constant 0 : i32
    return %arg0, %c0_i32 : i32, i32
  }
  func.func @transform_1(%arg0: i32, %arg1: i32) -> (i32, i32) {
    %c0_i32 = arith.constant 0 : i32
    %c0_i32_0 = arith.constant 0 : i32
    return %c0_i32, %arg1 : i32, i32
  }
  func.func @transform_2(%arg0: i32, %arg1: i32) -> (i32, i32) {
    %c0_i32 = arith.constant 0 : i32
    return %arg0, %arg1 : i32, i32
  }
}

</mosaic_0001>

<bundles_post_ra>
// kernel: tpu_custom_call.1
= control target key start
LH: loop header
LB: loop body
LE: loop exit
PB: predicated region body
PF: predicated region fallthrough
CT: control target
= control target key end

     0   :  { %7 = vsyncpa [#allocation3], 0  ;;  %s453_s0 = inlined_call_operand.hbm [shape: bf16[16,256], index: 0, kind: input, shape index: {}]   ;;  %s454_s1 = inlined_call_operand.hbm [shape: bf16[256,128], index: 1, kind: input, shape index: {}]   ;;  %s455_s2 = inlined_call_operand.hbm [shape: bf16[16,128], index: 2, kind: output, shape index: {}]  }
   0x1   :  { %8 = vsyncpa [#allocation6], 0 }
   0x2   :  { %9 = vsyncpa [#allocation4], 0  ;;  %s14_s11 = sshll.u32 %s453_s0, 4  ;;  %s416_s12 = smov [#allocation2]   ;;  %s15_s11 = int_to_ptr.hbm [resolvable:$true] %s14_s11 }
   0x3   :  { %s16_s13 = sshll.u32 %s416_s12, 4  ;;  %s27_s16 = sshll.u32 %s454_s1, 4  ;;  %s17_s13 = int_to_ptr.vmem [resolvable:$true] %s16_s13  ;;  %s28_s16 = int_to_ptr.hbm [resolvable:$true] %s27_s16 }
   0x4   :  { %s417_s17 = smov 128   ;;  %s418_s18 = smov 8  }
   0x5   :  { %22 = dma.hbm_to_vmem [thread:$0]  %s15_s11, 256, %s17_s13, [#allocation3], %s417_s17, %s417_s17, %s418_s18  }
   0x6   :  { %s419_s19 = smov [#allocation5]   ;;  %s420_s21 = smov 64  }
   0x7   :  { %s29_s20 = sshll.u32 %s419_s19, 4  ;;  %s421_s22 = smov 4   ;;  %s30_s20 = int_to_ptr.vmem [resolvable:$true] %s29_s20 }
   0x8   :  { %35 = dma.hbm_to_vmem [thread:$0]  %s28_s16, 2048, %s30_s20, [#allocation6], %s420_s21, %s420_s21, %s421_s22  }
   0x9   :  { %410 = dma.done.wait [#allocation3], 256  }
   0xa   :  { %411 = vsyncadd [#allocation3], 4294967040 }
   0xb   :  { %412 = dma.done.wait [#allocation6], 2048  }
   0xc   :  { %413 = vsyncadd [#allocation6], 4294965248  ;;  %v317_v0 = vld [vmem:[#allocation5 + $0x38] sm:$0xff]  ;;  %v316_v2 = vld [vmem:[#allocation5 + $0x30] sm:$0xff]  ;;  %s422_s0 = smov [#allocation7]   ;;  %s222_s25 = sshll.u32 %s455_s2, 4  ;;  %s223_s25 = int_to_ptr.hbm [resolvable:$true] %s222_s25 }
   0xd   :  { %v325_v1 = vld [vmem:[#allocation5 + $0x78] sm:$0xff]  ;;  %184 = vmatpush.bf16.msra.mxu0 %v317_v0  ;;  %v324_v3 = vld [vmem:[#allocation5 + $0x70] sm:$0xff]  ;;  %v315_v4 = vld [vmem:[#allocation5 + $0x28] sm:$0xff]  ;;  %s220_s1 = sshll.u32 %s422_s0, 4  ;;  %s221_s1 = int_to_ptr.vmem [resolvable:$true] %s220_s1 }
   0xe   :  { %198 = vmatpush.bf16.msra.mxu1 %v325_v1  ;;  %v323_v5 = vld [vmem:[#allocation5 + $0x68] sm:$0xff]  ;;  %v314_v6 = vld [vmem:[#allocation5 + $0x20] sm:$0xff]  ;;  %v313_v8 = vld [vmem:[#allocation5 + $0x18] sm:$0xff] }
   0xf   :  { %v322_v7 = vld [vmem:[#allocation5 + $0x60] sm:$0xff]  ;;  %v321_v9 = vld [vmem:[#allocation5 + $0x58] sm:$0xff]  ;;  %v312_v10 = vld [vmem:[#allocation5 + $0x10] sm:$0xff] }
  0x10   :  { %v320_v11 = vld [vmem:[#allocation5 + $0x50] sm:$0xff]  ;;  %v311_v12 = vld [vmem:[#allocation5 + $0x8] sm:$0xff]  ;;  %v310_v14 = vld [vmem:[#allocation5] sm:$0xff] }
  0x11   :  { %185 = vmatpush.bf16.msra.mxu0 %v316_v2  ;;  %v319_v13 = vld [vmem:[#allocation5 + $0x48] sm:$0xff]  ;;  %v318_v15 = vld [vmem:[#allocation5 + $0x40] sm:$0xff]  ;;  %v238_v16 = vld [vmem:[#allocation2] sm:$0xf] }
  0x12   :  { %199 = vmatpush.bf16.msra.mxu1 %v324_v3  ;;  %v309_v17 = vld [vmem:[#allocation2 + $0x4] sm:$0xf0]  ;;  %v308_v18 = vld [vmem:[#allocation2 + $0x4] sm:$0xf]  ;;  %v240_v19 = vld [vmem:[#allocation2 + $0x8] sm:$0xf0] }
  0x13   :  { %v239_v20 = vor.u32 %v309_v17, %v238_v16  ;;  %v243_v21 = vor.u32 %v308_v18, %v240_v19 }
  0x15   :  { %186 = vmatpush.bf16.msra.mxu0 %v315_v4 }
  0x16   :  { %200 = vmatpush.bf16.msra.mxu1 %v323_v5 }
  0x19   :  { %187 = vmatpush.bf16.msra.mxu0 %v314_v6 }
  0x1a   :  { %201 = vmatpush.bf16.msra.mxu1 %v322_v7 }
  0x1d   :  { %188 = vmatpush.bf16.msra.mxu0 %v313_v8 }
  0x1e   :  { %202 = vmatpush.bf16.msra.mxu1 %v321_v9 }
  0x21   :  { %189 = vmatpush.bf16.msra.mxu0 %v312_v10 }
  0x22   :  { %203 = vmatpush.bf16.msra.mxu1 %v320_v11 }
  0x25   :  { %190 = vmatpush.bf16.msra.mxu0 %v311_v12 }
  0x26   :  { %204 = vmatpush.bf16.msra.mxu1 %v319_v13 }
  0x29   :  { %191 = vmatpush.bf16.msra.mxu0 %v310_v14 }
  0x2a   :  { %205 = vmatpush.bf16.msra.mxu1 %v318_v15 }
  0x2c   :  { %192 = vmatmul.bf16.vlgmr.msra.gmra.mxu0 %v239_v20 }
  0x2d   :  { %206 = vmatmul.bf16.vlgmr.msra.gmra.mxu1 %v243_v21 }
  0xa9   :  { %v193_v22 = vpop.f32.mrf.mxu0 }
  0xaa   :  { %v207_v23 = vpop.f32.mrf.mxu1 }
  0xab   :  { %v208_v26 = vadd.f32 %v207_v23, %v193_v22 }
  0xb1   :  { %v195_v24 = vpop.f32.mrf.mxu0 }
  0xb2   :  { %v209_v25 = vpop.f32.mrf.mxu1 }
  0xb3   :  { %v210_v27 = vadd.f32 %v209_v25, %v195_v24 }
  0xb5   :  { %v329_v28 = vpack.c.bf16 %v210_v27, %v208_v26 }
  0xb7   :  { %330 = vst [vmem:[#allocation7] sm:$0xff] %v329_v28  }
  0xb8   :  { %228 = dma.vmem_to_hbm [thread:$0]  %s221_s1, 128, %s223_s25, [#allocation4], %s420_s21, %s420_s21, %s421_s22  }
  0xb9   :  { %414 = dma.done.wait [#allocation4], 128  }
  0xba   :  { %415 = vsyncadd [#allocation4], 4294967168 }
  0xbb   :  { %233 = vsyncpa [#allocation3], 1 }
  0xbc   :  { %234 = vsyncpa [#allocation6], 1 }
  0xbd   :  { %235 = vsyncpa [#allocation4], 1 }

</bundles_post_ra>
